<compile_context>
chip_gen: v7x
topology: tpu7x:2x2x1
jax: 0.10.0
libtpu: 0.0.40
codegen_flags: <defaults>
</compile_context>

<pallas_src>
import functools

import jax
import jax.numpy as jnp
from jax import lax
from jax.experimental import pallas as pl
from jax.experimental.pallas import tpu as pltpu


def _round_up(a: int, b: int) -> int:
    return ((a + b - 1) // b) * b


def _feature_mixing_kernel(xp_ref, w1t_ref, b1_ref, w2t_ref, b2_ref, o_ref,
                           *, pack: int, channels: int):
    """One grid step over a lane-dense, sublane-packed activation tile.

    xp_ref : (pack*channels, TM)  packed x^T tile (activation dtype, streamed)
    w1t_ref: (H, channels)        BN-folded W1^T (f32, resident)
    b1_ref : (H, 1)               BN-folded b1   (f32, resident)
    w2t_ref: (channels, H)        W2^T (activation dtype, resident)
    b2_ref : (channels, 1)        b2 (f32, resident)
    o_ref  : (pack*channels, TM)  packed output tile
    """
    w1t = w1t_ref[...]
    b1 = b1_ref[...]
    w2t = w2t_ref[...]
    b2 = b2_ref[...]
    # f32 path must stay exact vs. the f32 reference; bf16 runs full MXU rate.
    prec = (lax.Precision.HIGHEST if w2t.dtype == jnp.float32
            else lax.Precision.DEFAULT)

    for p in range(pack):                      # static unroll over row groups
        # linear1 (+ folded BN) on the VPU: K = channels (e.g. 4) would waste
        # >96% of the MXU contraction depth, so do `channels` broadcast-FMAs.
        h = None
        for c in range(channels):
            r = p * channels + c
            row = xp_ref[r:r + 1, :].astype(jnp.float32)         # (1, TM)
            term = w1t[:, c:c + 1] * row                         # (H, TM)
            h = term if h is None else h + term
        h = jnp.maximum(h + b1, 0.0)                             # ReLU, f32

        # linear2 on the MXU (K = H): small weight matrix as LHS (stationary),
        # big activation tile streams; f32 accumulation.
        z = jnp.dot(w2t, h.astype(w2t.dtype),
                    preferred_element_type=jnp.float32,
                    precision=prec) + b2                         # (channels, TM)

        # Identity residual, write this packed row group.
        res = xp_ref[p * channels:(p + 1) * channels, :].astype(jnp.float32)
        o_ref[p * channels:(p + 1) * channels, :] = (z + res).astype(o_ref.dtype)


def prepare_feature_mixing_params(w1, b1, w2, b2, gamma, beta,
                                  running_mean, running_var,
                                  eps=1e-5, act_dtype=jnp.float32):
    """Fold eval-mode BatchNorm2d(num_features=1) into linear1 and pre-transpose
    the weights.  Call ONCE per weight set (hoisted out of the forward path).

    BN2d(num_features=1) is a single scalar scale/shift:
      y = x*scale + shift  =>  y @ W1 + b1 = x @ (scale*W1) + (b1 + shift*sum_c W1)
    """
    scale = (gamma / jnp.sqrt(running_var + eps)).astype(jnp.float32).reshape(())
    shift = (beta - running_mean * scale).astype(jnp.float32).reshape(())
    w1f = w1.astype(jnp.float32) * scale                              # (C, H)
    b1f = b1.astype(jnp.float32) + shift * jnp.sum(w1.astype(jnp.float32), axis=0)
    H = w1.shape[1]
    Co = w2.shape[1]
    return {
        "w1t": w1f.T,                                  # (H, C)  f32
        "b1": b1f.reshape(H, 1),                       # (H, 1)  f32
        "w2t": jnp.asarray(w2).T.astype(act_dtype),    # (Co, H) activation dtype
        "b2": jnp.asarray(b2).astype(jnp.float32).reshape(Co, 1),
    }


def feature_mixing_packed(xp, params, *, channels, pack, tile_m=16384,
                          input_buffers=2, vmem_limit_bytes=32 * 1024 * 1024):
    """Core kernel on the packed channel-major layout xp: (pack*channels, Mp).

    Keep activations in this layout across TSMixer blocks to avoid per-block
    transpose passes over HBM.
    """
    PC, Mp = xp.shape
    assert PC == pack * channels
    H = params["w1t"].shape[0]
    Co = params["w2t"].shape[0]
    assert Co == channels, "identity residual requires out_features == in_features"
    # TODO(synk): out_features != in_features would need the residual_conn
    # linear projection fused here as a third (tiny) matmul.

    # Large tiles amortize the per-grid-step pipeline overhead; cap so the
    # grid keeps >=2 steps (both v7x TensorCores get work).
    tm = max(128, min(tile_m, _round_up(pl.cdiv(Mp, 2), 128)))
    grid = (pl.cdiv(Mp, tm),)          # ragged last block: no full-tile padding

    x_spec = (pl.BlockSpec((PC, tm), lambda i: (0, i))
              if input_buffers == 2 else
              pl.BlockSpec((PC, tm), lambda i: (0, i),
                           pipeline_mode=pl.Buffered(input_buffers)))

    kernel = functools.partial(_feature_mixing_kernel,
                               pack=pack, channels=channels)

    return pl.pallas_call(
        kernel,
        out_shape=jax.ShapeDtypeStruct((PC, Mp), xp.dtype),
        grid=grid,
        in_specs=[
            x_spec,                                          # x^T tile (streamed)
            pl.BlockSpec((H, channels), lambda i: (0, 0)),   # W1'^T (resident)
            pl.BlockSpec((H, 1), lambda i: (0, 0)),          # b1'
            pl.BlockSpec((Co, H), lambda i: (0, 0)),         # W2^T (resident)
            pl.BlockSpec((Co, 1), lambda i: (0, 0)),         # b2
        ],
        out_specs=pl.BlockSpec((PC, tm), lambda i: (0, i)),
        compiler_params=pltpu.CompilerParams(
            dimension_semantics=("parallel",),
            vmem_limit_bytes=vmem_limit_bytes,
            allow_input_fusion=[True, False, False, False, False],
        ),
    )(xp, params["w1t"], params["b1"], params["w2t"], params["b2"])


def feature_mixing(x, params, *, tile_m=16384):
    """(B, T, C) convenience wrapper: packs to channel-major, runs the kernel,
    unpacks.  The pack/unpack transposes cost one extra HBM pass each; for a
    multi-block TSMixer stack keep the packed layout and call
    feature_mixing_packed directly."""
    B, T, C = x.shape
    M = B * T

    # Pack `pack` consecutive rows per lane column so every sublane of the
    # streamed (8,128) f32 / (16,128) bf16 tiles carries real data.
    sublanes = 32 // jnp.dtype(x.dtype).itemsize          # 8 f32, 16 bf16
    pack = sublanes // C if (C <= sublanes and sublanes % C == 0) else 1

    m_rows = _round_up(M, pack)
    x2 = x.reshape(M, C)
    if m_rows != M:                                        # at most pack-1 rows
        x2 = jnp.pad(x2, ((0, m_rows - M), (0, 0)))
    xp = x2.reshape(m_rows // pack, pack * C).T            # (pack*C, Mp)

    out_p = feature_mixing_packed(xp, params, channels=C, pack=pack,
                                  tile_m=tile_m)

    return out_p.T.reshape(m_rows, C)[:M].reshape(B, T, C)


def _reference(x, w1, b1, w2, b2, gamma, beta, rm, rv, eps=1e-5):
    xf = x.astype(jnp.float32)
    y = (xf - rm) / jnp.sqrt(rv + eps) * gamma + beta
    y = jnp.maximum(y @ w1 + b1, 0.0)
    y = y @ w2 + b2
    return (y + xf).astype(x.dtype)


if __name__ == "__main__":
    # Shapes implied by the module: input (batch, seq, in_features).
    B, T, C = 2, 8, 4          # batch=2, seq=8, in_features=4
    H = 32                     # hidden_layer_size=32
    # out_features='default' -> in_features -> Identity residual.

    key = jax.random.PRNGKey(0)
    kx, k1, kb1, k2, kb2 = jax.random.split(key, 5)

    x = jax.random.normal(kx, (B, T, C), dtype=jnp.float32)

    # Deterministic kaiming_normal-style init; weights stored (in, out).
    w1 = jax.random.normal(k1, (C, H), dtype=jnp.float32) * jnp.sqrt(2.0 / C)
    w2 = jax.random.normal(k2, (H, C), dtype=jnp.float32) * jnp.sqrt(2.0 / H)
    b1 = jax.random.uniform(kb1, (H,), jnp.float32,
                            -1.0 / jnp.sqrt(C), 1.0 / jnp.sqrt(C))
    b2 = jax.random.uniform(kb2, (C,), jnp.float32,
                            -1.0 / jnp.sqrt(H), 1.0 / jnp.sqrt(H))

    # BatchNorm2d(num_features=1) affine params / running stats (non-trivial
    # to exercise the BN-into-linear1 fold).
    gamma = jnp.array(1.2, jnp.float32)
    beta = jnp.array(0.1, jnp.float32)
    running_mean = jnp.array(0.05, jnp.float32)
    running_var = jnp.array(0.9, jnp.float32)

    # Weight prep hoisted out of the forward path (done once per weight set).
    params = prepare_feature_mixing_params(w1, b1, w2, b2, gamma, beta,
                                           running_mean, running_var)

    fwd = jax.jit(functools.partial(feature_mixing, tile_m=16384))
    out = jax.block_until_ready(fwd(x, params))

    ref = _reference(x, w1, b1, w2, b2, gamma, beta, running_mean, running_var)
    assert out.shape == (B, T, C)
    assert jnp.allclose(out, ref, atol=1e-5, rtol=1e-5), "mismatch vs JAX reference"

    print("KERNEL_OK")
</pallas_src>

<mosaic_0001>
module attributes {stable_mosaic.version = 11 : i64} {
  func.func @_feature_mixing_kernel(%arg0: i32, %arg1: memref<8x128xf32, #tpu.memory_space<vmem>>, %arg2: memref<32x4xf32, #tpu.memory_space<vmem>>, %arg3: memref<32x1xf32, #tpu.memory_space<vmem>>, %arg4: memref<4x32xf32, #tpu.memory_space<vmem>>, %arg5: memref<4x1xf32, #tpu.memory_space<vmem>>, %arg6: memref<8x128xf32, #tpu.memory_space<vmem>>) attributes {dimension_semantics = [#tpu.dimension_semantics<parallel>], iteration_bounds = array<i64: 1>, scalar_prefetch = 0 : i64, scratch_operands = 0 : i64, tpu.core_type = #tpu.core_type<tc>, window_params = [{transform_indices = @transform_0, window_bounds = array<i64: 8, 128>}, {pipeline_mode = #tpu.pipeline_mode<synchronous>, transform_indices = @transform_1, window_bounds = array<i64: 32, 4>}, {pipeline_mode = #tpu.pipeline_mode<synchronous>, transform_indices = @transform_2, window_bounds = array<i64: 32, 1>}, {pipeline_mode = #tpu.pipeline_mode<synchronous>, transform_indices = @transform_3, window_bounds = array<i64: 4, 32>}, {pipeline_mode = #tpu.pipeline_mode<synchronous>, transform_indices = @transform_4, window_bounds = array<i64: 4, 1>}, {transform_indices = @transform_5, window_bounds = array<i64: 8, 128>}]} {
    %c0 = arith.constant 0 : index
    %c0_0 = arith.constant 0 : index
    %0 = vector.load %arg2[%c0, %c0_0] : memref<32x4xf32, #tpu.memory_space<vmem>>, vector<32x4xf32>
    %c0_1 = arith.constant 0 : index
    %c0_2 = arith.constant 0 : index
    %1 = vector.load %arg3[%c0_1, %c0_2] : memref<32x1xf32, #tpu.memory_space<vmem>>, vector<32x1xf32>
    %c0_3 = arith.constant 0 : index
    %c0_4 = arith.constant 0 : index
    %2 = vector.load %arg4[%c0_3, %c0_4] : memref<4x32xf32, #tpu.memory_space<vmem>>, vector<4x32xf32>
    %c0_5 = arith.constant 0 : index
    %c0_6 = arith.constant 0 : index
    %3 = vector.load %arg5[%c0_5, %c0_6] : memref<4x1xf32, #tpu.memory_space<vmem>>, vector<4x1xf32>
    %c0_7 = arith.constant 0 : index
    %c0_8 = arith.constant 0 : index
    %4 = vector.load %arg1[%c0_7, %c0_8] : memref<8x128xf32, #tpu.memory_space<vmem>>, vector<1x128xf32>
    %5 = vector.extract_strided_slice %0 {offsets = [0, 0], sizes = [32, 1], strides = [1, 1]} : vector<32x4xf32> to vector<32x1xf32>
    %6 = vector.broadcast %5 : vector<32x1xf32> to vector<32x128xf32>
    %7 = vector.broadcast %4 : vector<1x128xf32> to vector<32x128xf32>
    %8 = arith.mulf %6, %7 : vector<32x128xf32>
    %c1 = arith.constant 1 : index
    %c0_9 = arith.constant 0 : index
    %9 = vector.load %arg1[%c1, %c0_9] : memref<8x128xf32, #tpu.memory_space<vmem>>, vector<1x128xf32>
    %10 = vector.extract_strided_slice %0 {offsets = [0, 1], sizes = [32, 1], strides = [1, 1]} : vector<32x4xf32> to vector<32x1xf32>
    %11 = vector.broadcast %10 : vector<32x1xf32> to vector<32x128xf32>
    %12 = vector.broadcast %9 : vector<1x128xf32> to vector<32x128xf32>
    %13 = arith.mulf %11, %12 : vector<32x128xf32>
    %14 = arith.addf %8, %13 : vector<32x128xf32>
    %c2 = arith.constant 2 : index
    %c0_10 = arith.constant 0 : index
    %15 = vector.load %arg1[%c2, %c0_10] : memref<8x128xf32, #tpu.memory_space<vmem>>, vector<1x128xf32>
    %16 = vector.extract_strided_slice %0 {offsets = [0, 2], sizes = [32, 1], strides = [1, 1]} : vector<32x4xf32> to vector<32x1xf32>
    %17 = vector.broadcast %16 : vector<32x1xf32> to vector<32x128xf32>
    %18 = vector.broadcast %15 : vector<1x128xf32> to vector<32x128xf32>
    %19 = arith.mulf %17, %18 : vector<32x128xf32>
    %20 = arith.addf %14, %19 : vector<32x128xf32>
    %c3 = arith.constant 3 : index
    %c0_11 = arith.constant 0 : index
    %21 = vector.load %arg1[%c3, %c0_11] : memref<8x128xf32, #tpu.memory_space<vmem>>, vector<1x128xf32>
    %22 = vector.extract_strided_slice %0 {offsets = [0, 3], sizes = [32, 1], strides = [1, 1]} : vector<32x4xf32> to vector<32x1xf32>
    %23 = vector.broadcast %22 : vector<32x1xf32> to vector<32x128xf32>
    %24 = vector.broadcast %21 : vector<1x128xf32> to vector<32x128xf32>
    %25 = arith.mulf %23, %24 : vector<32x128xf32>
    %26 = arith.addf %20, %25 : vector<32x128xf32>
    %27 = vector.broadcast %1 : vector<32x1xf32> to vector<32x128xf32>
    %28 = arith.addf %26, %27 : vector<32x128xf32>
    %cst = arith.constant 0.000000e+00 : f32
    %29 = vector.broadcast %cst : f32 to vector<32x128xf32>
    %30 = arith.maximumf %28, %29 : vector<32x128xf32>
    %cst_12 = arith.constant dense<0.000000e+00> : vector<4x128xf32>
    %31 = tpu.matmul %2, %30, %cst_12 {dimension_numbers = #tpu.dot_dimension_numbers<[1], [0], [0], [1], [0, 0, 1, 1], [], []>, precision = #tpu.contract_precision<fp32>} : vector<4x32xf32>, vector<32x128xf32>, vector<4x128xf32> -> vector<4x128xf32>
    %32 = vector.broadcast %3 : vector<4x1xf32> to vector<4x128xf32>
    %33 = arith.addf %31, %32 : vector<4x128xf32>
    %c0_13 = arith.constant 0 : index
    %c0_14 = arith.constant 0 : index
    %34 = vector.load %arg1[%c0_13, %c0_14] : memref<8x128xf32, #tpu.memory_space<vmem>>, vector<4x128xf32>
    %35 = arith.addf %33, %34 : vector<4x128xf32>
    %c0_15 = arith.constant 0 : index
    %c0_16 = arith.constant 0 : index
    %36 = vector.load %arg6[%c0_15, %c0_16] : memref<8x128xf32, #tpu.memory_space<vmem>>, vector<4x128xf32>
    tpu.vector_store %arg6[%c0_15, %c0_16], %35 {strides = array<i32>} : memref<8x128xf32, #tpu.memory_space<vmem>>, vector<4x128xf32>,
    %c4 = arith.constant 4 : index
    %c0_17 = arith.constant 0 : index
    %37 = vector.load %arg1[%c4, %c0_17] : memref<8x128xf32, #tpu.memory_space<vmem>>, vector<1x128xf32>
    %38 = vector.extract_strided_slice %0 {offsets = [0, 0], sizes = [32, 1], strides = [1, 1]} : vector<32x4xf32> to vector<32x1xf32>
    %39 = vector.broadcast %38 : vector<32x1xf32> to vector<32x128xf32>
    %40 = vector.broadcast %37 : vector<1x128xf32> to vector<32x128xf32>
    %41 = arith.mulf %39, %40 : vector<32x128xf32>
    %c5 = arith.constant 5 : index
    %c0_18 = arith.constant 0 : index
    %42 = vector.load %arg1[%c5, %c0_18] : memref<8x128xf32, #tpu.memory_space<vmem>>, vector<1x128xf32>
    %43 = vector.extract_strided_slice %0 {offsets = [0, 1], sizes = [32, 1], strides = [1, 1]} : vector<32x4xf32> to vector<32x1xf32>
    %44 = vector.broadcast %43 : vector<32x1xf32> to vector<32x128xf32>
    %45 = vector.broadcast %42 : vector<1x128xf32> to vector<32x128xf32>
    %46 = arith.mulf %44, %45 : vector<32x128xf32>
    %47 = arith.addf %41, %46 : vector<32x128xf32>
    %c6 = arith.constant 6 : index
    %c0_19 = arith.constant 0 : index
    %48 = vector.load %arg1[%c6, %c0_19] : memref<8x128xf32, #tpu.memory_space<vmem>>, vector<1x128xf32>
    %49 = vector.extract_strided_slice %0 {offsets = [0, 2], sizes = [32, 1], strides = [1, 1]} : vector<32x4xf32> to vector<32x1xf32>
    %50 = vector.broadcast %49 : vector<32x1xf32> to vector<32x128xf32>
    %51 = vector.broadcast %48 : vector<1x128xf32> to vector<32x128xf32>
    %52 = arith.mulf %50, %51 : vector<32x128xf32>
    %53 = arith.addf %47, %52 : vector<32x128xf32>
    %c7 = arith.constant 7 : index
    %c0_20 = arith.constant 0 : index
    %54 = vector.load %arg1[%c7, %c0_20] : memref<8x128xf32, #tpu.memory_space<vmem>>, vector<1x128xf32>
    %55 = vector.extract_strided_slice %0 {offsets = [0, 3], sizes = [32, 1], strides = [1, 1]} : vector<32x4xf32> to vector<32x1xf32>
    %56 = vector.broadcast %55 : vector<32x1xf32> to vector<32x128xf32>
    %57 = vector.broadcast %54 : vector<1x128xf32> to vector<32x128xf32>
    %58 = arith.mulf %56, %57 : vector<32x128xf32>
    %59 = arith.addf %53, %58 : vector<32x128xf32>
    %60 = vector.broadcast %1 : vector<32x1xf32> to vector<32x128xf32>
    %61 = arith.addf %59, %60 : vector<32x128xf32>
    %cst_21 = arith.constant 0.000000e+00 : f32
    %62 = vector.broadcast %cst_21 : f32 to vector<32x128xf32>
    %63 = arith.maximumf %61, %62 : vector<32x128xf32>
    %cst_22 = arith.constant dense<0.000000e+00> : vector<4x128xf32>
    %64 = tpu.matmul %2, %63, %cst_22 {dimension_numbers = #tpu.dot_dimension_numbers<[1], [0], [0], [1], [0, 0, 1, 1], [], []>, precision = #tpu.contract_precision<fp32>} : vector<4x32xf32>, vector<32x128xf32>, vector<4x128xf32> -> vector<4x128xf32>
    %65 = vector.broadcast %3 : vector<4x1xf32> to vector<4x128xf32>
    %66 = arith.addf %64, %65 : vector<4x128xf32>
    %c4_23 = arith.constant 4 : index
    %c0_24 = arith.constant 0 : index
    %67 = vector.load %arg1[%c4_23, %c0_24] : memref<8x128xf32, #tpu.memory_space<vmem>>, vector<4x128xf32>
    %68 = arith.addf %66, %67 : vector<4x128xf32>
    %c4_25 = arith.constant 4 : index
    %c0_26 = arith.constant 0 : index
    %69 = vector.load %arg6[%c4_25, %c0_26] : memref<8x128xf32, #tpu.memory_space<vmem>>, vector<4x128xf32>
    tpu.vector_store %arg6[%c4_25, %c0_26], %68 {strides = array<i32>} : memref<8x128xf32, #tpu.memory_space<vmem>>, vector<4x128xf32>,
    return
  }
  func.func @transform_0(%arg0: i32) -> (i32, i32) {
    %c0_i32 = arith.constant 0 : i32
    %c0_i32_0 = arith.constant 0 : i32
    return %c0_i32, %arg0 : i32, i32
  }
  func.func @transform_1(%arg0: i32) -> (i32, i32) {
    %c0_i32 = arith.constant 0 : i32
    %c0_i32_0 = arith.constant 0 : i32
    %c0_i32_1 = arith.constant 0 : i32
    return %c0_i32, %c0_i32_0 : i32, i32
  }
  func.func @transform_2(%arg0: i32) -> (i32, i32) {
    %c0_i32 = arith.constant 0 : i32
    %c0_i32_0 = arith.constant 0 : i32
    %c0_i32_1 = arith.constant 0 : i32
    return %c0_i32, %c0_i32_0 : i32, i32
  }
  func.func @transform_3(%arg0: i32) -> (i32, i32) {
    %c0_i32 = arith.constant 0 : i32
    %c0_i32_0 = arith.constant 0 : i32
    %c0_i32_1 = arith.constant 0 : i32
    return %c0_i32, %c0_i32_0 : i32, i32
  }
  func.func @transform_4(%arg0: i32) -> (i32, i32) {
    %c0_i32 = arith.constant 0 : i32
    %c0_i32_0 = arith.constant 0 : i32
    %c0_i32_1 = arith.constant 0 : i32
    return %c0_i32, %c0_i32_0 : i32, i32
  }
  func.func @transform_5(%arg0: i32) -> (i32, i32) {
    %c0_i32 = arith.constant 0 : i32
    %c0_i32_0 = arith.constant 0 : i32
    return %c0_i32, %arg0 : i32, i32
  }
}

</mosaic_0001>

<bundles_post_ra>
// kernel: feature_mixing.2
= control target key start
LH: loop header
LB: loop body
LE: loop exit
PB: predicated region body
PF: predicated region fallthrough
CT: control target
= control target key end

     0   :  { %v1512_v1 = vmov 3   ;;  %v1513_v2 = vmov 1   ;;  %v1514_v5 = vmov 2   ;;  %v1515_v8 = vmov 0   ;;  %s1725_s0 = inlined_call_operand.vmem [shape: f32[32,4], index: 0, kind: input, shape index: {}]   ;;  %s1726_s1 = inlined_call_operand.vmem [shape: f32[32,1], index: 1, kind: input, shape index: {}]   ;;  %s1727_s2 = inlined_call_operand.vmem [shape: f32[4,32], index: 2, kind: input, shape index: {}]   ;;  %s1728_s3 = inlined_call_operand.vmem [shape: f32[4,1], index: 3, kind: input, shape index: {}]   ;;  %s1729_s4 = inlined_call_operand.vmem [shape: f32[8,8], index: 4, kind: input, shape index: {}]   ;;  %s1730_s5 = inlined_call_operand.vmem [shape: f32[8,8], index: 5, kind: output, shape index: {}]  }
   0x1   :  { %v23_v0 = vld [vmem:[%s1725_s0] sm:$0xff]  ;;  %1505 = vset.pattern.permute.xlu0 %v1512_v1  ;;  %1501 = vset.pattern.permute.xlu1 %v1513_v2  ;;  %v24_v3 = vld [vmem:[%s1725_s0 + $0x8] sm:$0xff]  ;;  %v26_v6 = vld [vmem:[%s1725_s0 + $0x18] sm:$0xff]  ;;  %v1516_v14 = vmov 0.0|0.0   ;;  %vm1517_vm0 = vmmov 0   ;;  %v1518_v15 = vmov 0.0  }
   0x2   :  { %122 = vperm.xlu0 %1505, %v23_v0   ;;  %64 = vperm.xlu1 %1501, %v23_v0   ;;  %v20_v4 = vld [vmem:[%s1729_s4] sm:$0xff]  ;;  %v25_v7 = vld [vmem:[%s1725_s0 + $0x10] sm:$0xff]  ;;  %v30_v10 = vld [vmem:[%s1726_s1 + $0x18] sm:$0xff]  ;;  %vm182_vm1 = vcmask 261120  }
   0x3   :  { %22 = vst [vmem:[#allocation2] sm:$0xff] %v20_v4  ;;  %v27_v9 = vld [vmem:[%s1726_s1] sm:$0xff]  ;;  %v28_v11 = vld [vmem:[%s1726_s1 + $0x8] sm:$0xff]  ;;  %v29_v12 = vld [vmem:[%s1726_s1 + $0x10] sm:$0xff]  ;;  %1422 = vmatprep.subr.bf16.mxu0 %v1516_v14  ;;  %1428 = vmatprep.subr.bf16.mxu1 %v1516_v14 }
   0x4   :  { %v32_v13 = vld [vmem:[%s1728_s3] sm:$0xf]  ;;  %1298 = vmatprep.mubr.msk.f32.mxu0 %vm1517_vm0, %v1518_v15  ;;  %1309 = vmatprep.mubr.msk.f32.mxu1 %vm1517_vm0, %v1518_v15 }
   0x5   :  { %v31_v39 = vld [vmem:[%s1727_s2] sm:$0xf] }
   0x6   :  { %1506 = vset.pattern.permute.xlu0 %v1514_v5  ;;  %68 = vperm.xlu1 %1501, %v24_v3   ;;  %v184_v43 = vsel %vm182_vm1, %v31_v39, 0 }
   0x7   :  { %93 = vperm.xlu0 %1506, %v23_v0   ;;  %v1604_v48 = vand.u32 4294901760, %v184_v43 }
   0x9   :  { %v1610_v56 = vsub.f32 %v184_v43, %v1604_v48 }
   0xa   :  { %1502 = vset.pattern.permute.xlu1 %v1514_v5  ;;  %v1222_v24 = vld [vmem:[#allocation2] ss:$0 sm:$0xff]  ;;  %v1223_v26 = vld [vmem:[#allocation2 + $0x1] ss:$0 sm:$0xff]  ;;  %v1224_v31 = vld [vmem:[#allocation2 + $0x2] ss:$0 sm:$0xff] }
   0xb   :  { %105 = vperm.xlu0 %1506, %v26_v6   ;;  %97 = vperm.xlu1 %1502, %v24_v3   ;;  %v1225_v34 = vld [vmem:[#allocation2 + $0x3] ss:$0 sm:$0xff]  ;;  %v1226_v55 = vld [vmem:[#allocation2 + $0x4] ss:$0 sm:$0xff]  ;;  %v1227_v61 = vld [vmem:[#allocation2 + $0x5] ss:$0 sm:$0xff] }
   0xf   :  { %1509 = vset.pattern.permute.xlu0 %v1515_v8  ;;  %1503 = vset.pattern.permute.xlu1 %v1515_v8 }
  0x10   :  { %36 = vperm.xlu0 %1509, %v23_v0   ;;  %46 = vperm.xlu1 %1503, %v25_v7  }
  0x14   :  { %41 = vperm.xlu0 %1509, %v24_v3   ;;  %1504 = vset.pattern.permute.xlu1 %v1513_v2 }
  0x15   :  { %72 = vperm.xlu1 %1504, %v25_v7  }
  0x18   :  { %51 = vperm.xlu0 %1509, %v26_v6  }
  0x19   :  { %76 = vperm.xlu1 %1504, %v26_v6  }
  0x1c   :  { %151 = vperm.xlu0 %1509, %v27_v9  }
  0x1d   :  { %1507 = vset.pattern.permute.xlu1 %v1512_v1 }
  0x1e   :  { %126 = vperm.xlu1 %1507, %v24_v3  }
  0x20   :  { %166 = vperm.xlu0 %1509, %v30_v10  }
  0x22   :  { %1508 = vset.pattern.permute.xlu1 %v1514_v5 }
  0x23   :  { %101 = vperm.xlu1 %1508, %v25_v7  }
  0x27   :  { %1510 = vset.pattern.permute.xlu1 %v1512_v1  ;;  %v1229_v1 = vld [vmem:[#allocation2 + $0x7] ss:$0 sm:$0xff] }
  0x28   :  { %130 = vperm.xlu1 %1510, %v25_v7  }
  0x2c   :  { %134 = vperm.xlu1 %1510, %v26_v6  }
  0x30   :  { %1511 = vset.pattern.permute.xlu1 %v1515_v8  ;;  %v1617_v8 = vand.u32 4294901760, %v1610_v56 }
  0x31   :  { %156 = vperm.xlu1 %1511, %v28_v11  }
  0x35   :  { %161 = vperm.xlu1 %1511, %v29_v12  }
  0x39   :  { %179 = vperm.xlu1 %1511, %v32_v13  }
  0x81   :  { %v65_v16 = vpop.permute.xlu1 %64  ;;  %v123_v17 = vpop.permute.xlu0 %122 }
  0x82   :  { %v83_v29 = vmul.f32 %v1223_v26, %v65_v16  ;;  %v141_v37 = vmul.f32 %v1225_v34, %v123_v17  ;;  %v688_v9 = vmul.f32 %v1227_v61, %v65_v16 }
  0x85   :  { %v69_v18 = vpop.permute.xlu1 %68 }
  0x86   :  { %v1585_v19 = vpop.permute.xlu0 %93  ;;  %v84_v49 = vmul.f32 %v1223_v26, %v69_v18 }
  0x87   :  { %v112_v32 = vmul.f32 %v1224_v31, %v1585_v19 }
  0x8a   :  { %v1587_v20 = vpop.permute.xlu1 %97  ;;  %v1589_v21 = vpop.permute.xlu0 %105 }
  0x8b   :  { %v115_v51 = vmul.f32 %v1224_v31, %v1589_v21  ;;  %v113_v57 = vmul.f32 %v1224_v31, %v1587_v20 }
  0x8f   :  { %v37_v22 = vpop.permute.xlu0 %36  ;;  %v1591_v23 = vpop.permute.xlu1 %46 }
  0x90   :  { %v58_v28 = vmul.f32 %v1222_v24, %v37_v22  ;;  %v679_v2 = vmul.f32 %v1226_v55, %v37_v22  ;;  %v60_v3 = vmul.f32 %v1222_v24, %v1591_v23  ;;  %v1228_v22 = vld [vmem:[#allocation2 + $0x6] ss:$0 sm:$0xff] }
  0x92   :  { %v87_v33 = vadd.f32 %v83_v29, %v58_v28  ;;  %v689_v28 = vmul.f32 %v1227_v61, %v69_v18 }
  0x93   :  { %v42_v27 = vpop.permute.xlu0 %41 }
  0x94   :  { %v1593_v25 = vpop.permute.xlu1 %72  ;;  %v116_v38 = vadd.f32 %v112_v32, %v87_v33  ;;  %v59_v47 = vmul.f32 %v1222_v24, %v42_v27  ;;  %v680_v6 = vmul.f32 %v1226_v55, %v42_v27  ;;  %v701_v27 = vmul.f32 %v1228_v22, %v1585_v19 }
  0x95   :  { %v85_v58 = vmul.f32 %v1223_v26, %v1593_v25  ;;  %v692_v32 = vadd.f32 %v688_v9, %v679_v2 }
  0x96   :  { %v145_v41 = vadd.f32 %v141_v37, %v116_v38  ;;  %v88_v54 = vadd.f32 %v84_v49, %v59_v47  ;;  %v693_v16 = vadd.f32 %v689_v28, %v680_v6  ;;  %v681_v49 = vmul.f32 %v1226_v55, %v1591_v23 }
  0x97   :  { %v52_v35 = vpop.permute.xlu0 %51  ;;  %v89_v10 = vadd.f32 %v85_v58, %v60_v3 }
  0x98   :  { %v77_v30 = vpop.permute.xlu1 %76  ;;  %v61_v44 = vmul.f32 %v1222_v24, %v52_v35  ;;  %v117_v5 = vadd.f32 %v113_v57, %v88_v54  ;;  %v682_v38 = vmul.f32 %v1226_v55, %v52_v35 }
  0x99   :  { %v86_v45 = vmul.f32 %v1223_v26, %v77_v30  ;;  %v714_v26 = vmul.f32 %v1229_v1, %v123_v17  ;;  %v691_v39 = vmul.f32 %v1227_v61, %v77_v30  ;;  %v690_v17 = vmul.f32 %v1227_v61, %v1593_v25 }
  0x9b   :  { %v1599_v40 = vpop.permute.xlu0 %151  ;;  %v90_v52 = vadd.f32 %v86_v45, %v61_v44  ;;  %v704_v44 = vmul.f32 %v1228_v22, %v1589_v21  ;;  %v695_v30 = vadd.f32 %v691_v39, %v682_v38  ;;  %v694_v25 = vadd.f32 %v690_v17, %v681_v49 }
  0x9c   :  { %v169_v46 = vadd.f32 %v1599_v40, %v145_v41  ;;  %v258_v21 = vsub.f32 %v1610_v56, %v1617_v8 }
  0x9d   :  { %v127_v36 = vpop.permute.xlu1 %126  ;;  %v119_v63 = vadd.f32 %v115_v51, %v90_v52  ;;  %v705_v51 = vadd.f32 %v701_v27, %v692_v32 }
  0x9e   :  { %v173_v53 = vmax.f32 %v169_v46, 0.0  ;;  %v142_v59 = vmul.f32 %v1225_v34, %v127_v36  ;;  %v715_v45 = vmul.f32 %v1229_v1, %v127_v36 }
  0x9f   :  { %v1619_v11 = vpop.permute.xlu0 %166  ;;  %v718_v2 = vadd.f32 %v714_v26, %v705_v51 }
  0xa0   :  { %v187_v62 = vand.u32 4294901760, %v173_v53  ;;  %v146_v13 = vadd.f32 %v142_v59, %v117_v5 }
  0xa2   :  { %v1601_v42 = vpop.permute.xlu1 %101  ;;  %v1622_v29 = vsub.f32 %v173_v53, %v187_v62 }
  0xa3   :  { %v114_v4 = vmul.f32 %v1224_v31, %v1601_v42  ;;  %v703_v53 = vmul.f32 %v1228_v22, %v1601_v42 }
  0xa4   :  { %v268_v19 = vand.u32 4294901760, %v1622_v29 }
  0xa5   :  { %v118_v33 = vadd.f32 %v114_v4, %v89_v10  ;;  %v707_v3 = vadd.f32 %v703_v53, %v694_v25  ;;  %v708_v4 = vadd.f32 %v704_v44, %v695_v30 }
  0xa6   :  { %v269_v23 = vsub.f32 %v1622_v29, %v268_v19 }
  0xa7   :  { %v1606_v50 = vpop.permute.xlu1 %130 }
  0xa8   :  { %v143_v12 = vmul.f32 %v1225_v34, %v1606_v50  ;;  %v716_v36 = vmul.f32 %v1229_v1, %v1606_v50 }
  0xaa   :  { %v147_v43 = vadd.f32 %v143_v12, %v118_v33  ;;  %v720_v9 = vadd.f32 %v716_v36, %v707_v3 }
  0xab   :  { %v135_v60 = vpop.permute.xlu1 %134 }
  0xac   :  { %v144_v0 = vmul.f32 %v1225_v34, %v135_v60  ;;  %v702_v34 = vmul.f32 %v1228_v22, %v1587_v20  ;;  %v717_v55 = vmul.f32 %v1229_v1, %v135_v60  ;;  %v1648_v60 = vand.u32 4294901760, %v258_v21 }
  0xad   :  { %v270_v1 = vand.u32 4294901760, %v269_v23 }
  0xae   :  { %v148_v7 = vadd.f32 %v144_v0, %v119_v63  ;;  %v706_v20 = vadd.f32 %v702_v34, %v693_v16  ;;  %v721_v10 = vadd.f32 %v717_v55, %v708_v4 }
  0xb0   :  { %v172_v24 = vadd.f32 %v1619_v11, %v148_v7  ;;  %v157_v31 = vpop.permute.xlu1 %156  ;;  %v719_v59 = vadd.f32 %v715_v45, %v706_v20  ;;  %v722_v7 = vadd.f32 %v718_v2, %v1599_v40  ;;  %v725_v32 = vadd.f32 %v721_v10, %v1619_v11 }
  0xb1   :  { %v170_v37 = vadd.f32 %v157_v31, %v146_v13 }
  0xb2   :  { %v176_v41 = vmax.f32 %v172_v24, 0.0  ;;  %v723_v5 = vadd.f32 %v719_v59, %v157_v31  ;;  %v726_v40 = vmax.f32 %v722_v7, 0.0  ;;  %v729_v11 = vmax.f32 %v725_v32, 0.0 }
  0xb3   :  { %v174_v18 = vmax.f32 %v170_v37, 0.0 }
  0xb4   :  { %v162_v46 = vpop.permute.xlu1 %161  ;;  %v196_v47 = vand.u32 4294901760, %v176_v41  ;;  %v727_v28 = vmax.f32 %v723_v5, 0.0  ;;  %v731_v34 = vand.u32 4294901760, %v726_v40  ;;  %v740_v45 = vand.u32 4294901760, %v729_v11 }
  0xb5   :  { %v190_v52 = vand.u32 4294901760, %v174_v18  ;;  %v171_v35 = vadd.f32 %v162_v46, %v147_v43  ;;  %v724_v22 = vadd.f32 %v720_v9, %v162_v46 }
  0xb6   :  { %v1632_v54 = vsub.f32 %v176_v41, %v196_v47  ;;  %v734_v16 = vand.u32 4294901760, %v727_v28  ;;  %v811_v44 = vsub.f32 %v726_v40, %v731_v34 }
  0xb7   :  { %v274_v57 = vsub.f32 %v174_v18, %v190_v52  ;;  %v175_v58 = vmax.f32 %v171_v35, 0.0  ;;  %v1637_v61 = vpack.c.bf16 %v190_v52, %v187_v62  ;;  %v728_v38 = vmax.f32 %v724_v22, 0.0 }
  0xb8   :  { %v289_v0 = vand.u32 4294901760, %v1632_v54  ;;  %v1662_v17 = vsub.f32 %v727_v28, %v734_v16  ;;  %v1459_v35 = vpack.c.bf16 %v734_v16, %v731_v34  ;;  %v180_v2 = vpop.permute.xlu1 %179 }
  0xb9   :  { %v193_v42 = vand.u32 4294901760, %v175_v58  ;;  %v275_v63 = vand.u32 4294901760, %v274_v57  ;;  %1424 = vmatpush3.bf16.msra.mxu0 %v1637_v61  ;;  %v1435_v27 = vpack.c.bf16 %v274_v57, %v1622_v29  ;;  %v737_v18 = vand.u32 4294901760, %v728_v38 }
  0xba   :  { %1425 = vmatprep.subr.bf16.mxu0 %v1516_v14  ;;  %v290_v26 = vsub.f32 %v1632_v54, %v289_v0  ;;  %v819_v46 = vand.u32 4294901760, %v1662_v17  ;;  %v812_v29 = vand.u32 4294901760, %v811_v44  ;;  %v1471_v59 = vpack.c.bf16 %v1662_v17, %v811_v44 }
  0xbb   :  { %v281_v6 = vsub.f32 %v175_v58, %v193_v42  ;;  %v1645_v50 = vpack.c.bf16 %v196_v47, %v193_v42  ;;  %v276_v62 = vsub.f32 %v274_v57, %v275_v63  ;;  %v1447_v43 = vpack.c.bf16 %v275_v63, %v268_v19 }
  0xbc   :  { %v291_v37 = vand.u32 4294901760, %v290_v26  ;;  %v825_v47 = vsub.f32 %v728_v38, %v737_v18  ;;  %v832_v19 = vsub.f32 %v729_v11, %v740_v45  ;;  %v820_v51 = vsub.f32 %v1662_v17, %v819_v46 }
  0xbd   :  { %v277_v12 = vand.u32 4294901760, %v276_v62  ;;  %v282_v13 = vand.u32 4294901760, %v281_v6  ;;  %1427 = vmatpush3.bf16.msra.mxu0 %v1645_v50  ;;  %v1438_v41 = vpack.c.bf16 %v1632_v54, %v281_v6  ;;  %v813_v30 = vsub.f32 %v811_v44, %v812_v29 }
  0xbe   :  { %1434 = vmatprep.subr.bf16.mxu0 %v1516_v14  ;;  %v826_v52 = vand.u32 4294901760, %v825_v47  ;;  %v833_v53 = vand.u32 4294901760, %v832_v19  ;;  %v821_v20 = vand.u32 4294901760, %v820_v51  ;;  %v1462_v25 = vpack.c.bf16 %v740_v45, %v737_v18  ;;  %v1215_v18 = vld [vmem:[#allocation2 + $0x4] sm:$0xf] }
  0xbf   :  { %v1429_v24 = vpack.c.bf16 %v277_v12, %v270_v1  ;;  %v283_v31 = vsub.f32 %v281_v6, %v282_v13  ;;  %v1450_v49 = vpack.c.bf16 %v289_v0, %v282_v13  ;;  %v814_v57 = vand.u32 4294901760, %v813_v30  ;;  %v671_v12 = vld [vmem:[#allocation2] sm:$0xf] }
  0xc0   :  { %1299 = vmatmul.mubr.f32.vlgmr.msra.gmra.mrb[0].mxu0 %v1648_v60  ;;  %v827_v54 = vsub.f32 %v825_v47, %v826_v52  ;;  %v834_v58 = vsub.f32 %v832_v19, %v833_v53  ;;  %v1474_v55 = vpack.c.bf16 %v832_v19, %v825_v47  ;;  %v1483_v42 = vpack.c.bf16 %v819_v46, %v812_v29 }
  0xc1   :  { %1430 = vmatpush3.bf16.msra.mxu1 %v1429_v24  ;;  %v284_v33 = vand.u32 4294901760, %v283_v31  ;;  %1436 = vmatpush3.bf16.msra.mxu0 %v1435_v27  ;;  %v1465_v36 = vpack.c.bf16 %v821_v20, %v814_v57  ;;  %v1486_v63 = vpack.c.bf16 %v833_v53, %v826_v52 }
  0xc2   :  { %1431 = vmatprep.subr.bf16.mxu1 %v1516_v14  ;;  %1437 = vmatprep.subr.bf16.mxu0 %v1516_v14  ;;  %v828_v21 = vand.u32 4294901760, %v827_v54 }
  0xc3   :  { %v1432_v39 = vpack.c.bf16 %v291_v37, %v284_v33  ;;  %1320 = vmatprep.mubr.msk.f32.mxu0 %vm1517_vm0, %v1518_v15 }
  0xc5   :  { %1433 = vmatpush3.bf16.msra.mxu1 %v1432_v39  ;;  %1439 = vmatpush3.bf16.msra.mxu0 %v1438_v41 }
  0xc6   :  { %1440 = vmatprep.subr.bf16.mxu1 %v1516_v14  ;;  %1446 = vmatprep.subr.bf16.mxu0 %v1516_v14 }
  0xc8   :  { %1310 = vmatmul.mubr.f32.vlgmr.msra.gmra.mrb[0].mxu1 %v1604_v48  ;;  %1321 = vmatmul.mubr.f32.vlgmr.msra.gmra.mrb[2].mxu0 %v1610_v56 }
  0xc9   :  { %1442 = vmatpush3.bf16.msra.mxu1 %v1637_v61  ;;  %1448 = vmatpush3.bf16.msra.mxu0 %v1447_v43 }
  0xca   :  { %1443 = vmatprep.subr.bf16.mxu1 %v1516_v14  ;;  %1449 = vmatprep.subr.bf16.mxu0 %v1516_v14 }
  0xcb   :  { %1331 = vmatprep.mubr.msk.f32.mxu1 %vm1517_vm0, %v1518_v15  ;;  %1342 = vmatprep.mubr.msk.f32.mxu0 %vm1517_vm0, %v1518_v15 }
  0xcd   :  { %1445 = vmatpush3.bf16.msra.mxu1 %v1645_v50  ;;  %1451 = vmatpush3.bf16.msra.mxu0 %v1450_v49 }
  0xce   :  { %1452 = vmatprep.subr.bf16.mxu1 %v1516_v14  ;;  %1458 = vmatprep.subr.bf16.mxu0 %v1516_v14 }
  0xd0   :  { %1332 = vmatmul.mubr.f32.vlgmr.msra.gmra.mrb[2].mxu1 %v1617_v8  ;;  %1343 = vmatmul.mubr.f32.vlgmr.msra.gmra.mrb[4].mxu0 %v1604_v48 }
  0xd1   :  { %1454 = vmatpush3.bf16.msra.mxu1 %v1637_v61  ;;  %1460 = vmatpush3.bf16.msra.mxu0 %v1459_v35  ;;  %v835_v61 = vand.u32 4294901760, %v834_v58 }
  0xd2   :  { %1455 = vmatprep.subr.bf16.mxu1 %v1516_v14  ;;  %1461 = vmatprep.subr.bf16.mxu0 %v1516_v14 }
  0xd3   :  { %1353 = vmatprep.mubr.msk.f32.mxu1 %vm1517_vm0, %v1518_v15  ;;  %1364 = vmatprep.mubr.msk.f32.mxu0 %vm1517_vm0, %v1518_v15  ;;  %v1468_v23 = vpack.c.bf16 %v835_v61, %v828_v21 }
  0xd5   :  { %1457 = vmatpush3.bf16.msra.mxu1 %v1645_v50  ;;  %1463 = vmatpush3.bf16.msra.mxu0 %v1462_v25 }
  0xd6   :  { %1464 = vmatprep.subr.bf16.mxu1 %v1516_v14  ;;  %1470 = vmatprep.subr.bf16.mxu0 %v1516_v14 }
  0xd8   :  { %1354 = vmatmul.mubr.f32.vlgmr.msra.gmra.mrb[4].mxu1 %v1604_v48  ;;  %1365 = vmatmul.mubr.f32.vlgmr.msra.gmra.mrb[6].mxu0 %v1648_v60 }
  0xd9   :  { %1466 = vmatpush3.bf16.msra.mxu1 %v1465_v36  ;;  %1472 = vmatpush3.bf16.msra.mxu0 %v1471_v59 }
  0xda   :  { %1467 = vmatprep.subr.bf16.mxu1 %v1516_v14  ;;  %1473 = vmatprep.subr.bf16.mxu0 %v1516_v14 }
  0xdb   :  { %1375 = vmatprep.mubr.msk.f32.mxu1 %vm1517_vm0, %v1518_v15  ;;  %1386 = vmatprep.mubr.msk.f32.mxu0 %vm1517_vm0, %v1518_v15 }
  0xdd   :  { %1469 = vmatpush3.bf16.msra.mxu1 %v1468_v23  ;;  %1475 = vmatpush3.bf16.msra.mxu0 %v1474_v55 }
  0xde   :  { %1476 = vmatprep.subr.bf16.mxu1 %v1516_v14  ;;  %1482 = vmatprep.subr.bf16.mxu0 %v1516_v14 }
  0xe0   :  { %1376 = vmatmul.mubr.f32.vlgmr.msra.gmra.mrb[6].mxu1 %v1604_v48  ;;  %1387 = vmatmul.mubr.f32.vlgmr.msra.gmra.mrb[8].mxu0 %v1610_v56 }
  0xe1   :  { %1478 = vmatpush3.bf16.msra.mxu1 %v1459_v35  ;;  %1484 = vmatpush3.bf16.msra.mxu0 %v1483_v42 }
  0xe2   :  { %1479 = vmatprep.subr.bf16.mxu1 %v1516_v14  ;;  %1485 = vmatprep.subr.bf16.mxu0 %v1516_v14 }
  0xe3   :  { %1397 = vmatprep.mubr.msk.f32.mxu1 %vm1517_vm0, %v1518_v15  ;;  %1408 = vmatprep.mubr.msk.f32.mxu0 %vm1517_vm0, %v1518_v15 }
  0xe5   :  { %1481 = vmatpush3.bf16.msra.mxu1 %v1462_v25  ;;  %1487 = vmatpush3.bf16.msra.mxu0 %v1486_v63 }
  0xe6   :  { %1488 = vmatprep.subr.bf16.mxu1 %v1516_v14 }
  0xe8   :  { %1398 = vmatmul.mubr.f32.vlgmr.msra.gmra.mrb[8].mxu1 %v1617_v8  ;;  %1409 = vmatmul.mubr.f32.vlgmr.msra.gmra.mrb[10].mxu0 %v1604_v48 }
  0xe9   :  { %1490 = vmatpush3.bf16.msra.mxu1 %v1459_v35  ;;  %1419 = vmatprep.mubr.msk.f32.mxu1 %vm1517_vm0, %v1518_v15 }
  0xea   :  { %1491 = vmatprep.subr.bf16.mxu1 %v1516_v14 }
  0xed   :  { %1493 = vmatpush3.bf16.msra.mxu1 %v1462_v25 }
  0xf0   :  { %1420 = vmatmul.mubr.f32.vlgmr.msra.gmra.mrb[10].mxu1 %v1604_v48 }
 0x193   :  { %v261_v56 = vpop.f32.mrb[0].mxu0 }
 0x194   :  { %v1300_v0 = vpop.f32.mrb[1].mxu0  ;;  %v262_v3 = vadd.f32 %v261_v56, %v180_v2 }
 0x19b   :  { %v352_v4 = vpop.f32.mrb[0].mxu1  ;;  %v432_v50 = vpop.f32.mrb[2].mxu0 }
 0x19c   :  { %v353_v5 = vadd.f32 %v352_v4, %v262_v3  ;;  %v1311_v6 = vpop.f32.mrb[1].mxu1  ;;  %v1322_v8 = vpop.f32.mrb[3].mxu0 }
 0x19e   :  { %v433_v62 = vadd.f32 %v432_v50, %v353_v5 }
 0x1a3   :  { %v509_v7 = vpop.f32.mrb[2].mxu1  ;;  %v592_v14 = vpop.f32.mrb[4].mxu0 }
 0x1a4   :  { %v510_v9 = vadd.f32 %v509_v7, %v433_v62  ;;  %v1333_v60 = vpop.f32.mrb[3].mxu1  ;;  %v1344_v1 = vpop.f32.mrb[5].mxu0 }
 0x1a6   :  { %v593_v10 = vadd.f32 %v592_v14, %v510_v9 }
 0x1ab   :  { %v667_v15 = vpop.f32.mrb[4].mxu1  ;;  %v805_v48 = vpop.f32.mrb[6].mxu0 }
 0x1ac   :  { %v668_v13 = vadd.f32 %v667_v15, %v593_v10  ;;  %v1355_v26 = vpop.f32.mrb[5].mxu1  ;;  %v1366_v28 = vpop.f32.mrb[7].mxu0  ;;  %v806_v24 = vadd.f32 %v805_v48, %v180_v2 }
 0x1ae   :  { %v672_v22 = vadd.f32 %v671_v12, %v668_v13 }
 0x1b0   :  { %673 = vst [vmem:[%s1730_s5] sm:$0xf] %v672_v22 }
 0x1b3   :  { %v896_v31 = vpop.f32.mrb[6].mxu1  ;;  %v976_v32 = vpop.f32.mrb[8].mxu0 }
 0x1b4   :  { %v897_v27 = vadd.f32 %v896_v31, %v806_v24  ;;  %v1377_v40 = vpop.f32.mrb[7].mxu1  ;;  %v1388_v33 = vpop.f32.mrb[9].mxu0 }
 0x1b6   :  { %v977_v37 = vadd.f32 %v976_v32, %v897_v27 }
 0x1bb   :  { %v1053_v16 = vpop.f32.mrb[8].mxu1  ;;  %v1136_v41 = vpop.f32.mrb[10].mxu0 }
 0x1bc   :  { %v1054_v38 = vadd.f32 %v1053_v16, %v977_v37  ;;  %v1399_v39 = vpop.f32.mrb[9].mxu1  ;;  %v1410_v34 = vpop.f32.mrb[11].mxu0 }
 0x1be   :  { %v1137_v11 = vadd.f32 %v1136_v41, %v1054_v38 }
 0x1c3   :  { %v1211_v17 = vpop.f32.mrb[10].mxu1 }
 0x1c4   :  { %v1212_v43 = vadd.f32 %v1211_v17, %v1137_v11  ;;  %v1421_v44 = vpop.f32.mrb[11].mxu1 }
 0x1c6   :  { %v1216_v45 = vadd.f32 %v1215_v18, %v1212_v43 }
 0x1c8   :  { %1217 = vst [vmem:[%s1730_s5 + $0x4] sm:$0xf] %v1216_v45 }

</bundles_post_ra>
